<compile_context>
chip_gen: v5e
topology: v5e:2x2
jax: 0.10.0
libtpu: 0.0.40
codegen_flags: <defaults>
</compile_context>

<pallas_src>
import jax
import jax.numpy as jnp
from jax.experimental import pallas as pl
from jax.experimental.pallas import tpu as pltpu

# Synthetic hyper-params (the PyTorch script defines features = len(attributes);
# we pick a small deterministic value).
FEATURES = 16
IN_DIM = 2 * FEATURES          # 32
HID_DIM = IN_DIM // 2          # 16
OUT_DIM = 2

MAX_TB = 1024                  # batch tile (rows); 1024*32*f32 = 128 KiB/tile


def _round_up(n, m):
    return ((n + m - 1) // m) * m


def mlp_logsoftmax_kernel(x_ref, w2_ref, b2_ref, w3d_ref, b3d_ref, o_ref):
    # x_ref:   [TB, IN_DIM]
    # w2_ref:  [IN_DIM, HID_DIM]     (resident in VMEM across grid steps)
    # b2_ref:  [1, HID_DIM]
    # w3d_ref: [HID_DIM, 1]          (= w3[:,0] - w3[:,1])
    # b3d_ref: [1, 1]                (= b3[0]   - b3[1])
    # o_ref:   [TB, OUT_DIM]
    x = x_ref[...]

    # fc2 + ReLU
    h = jnp.dot(x, w2_ref[...], preferred_element_type=jnp.float32) + b2_ref[...]
    h = jnp.maximum(h, 0.0)

    # fc3 reduced to the logit difference d = logit0 - logit1  -> [TB, 1]
    d = jnp.dot(h, w3d_ref[...], preferred_element_type=jnp.float32) + b3d_ref[...]

    # 2-class log_softmax closed form (numerically stable softplus):
    #   softplus(d)  = max(d,0) + log1p(exp(-|d|))
    #   softplus(-d) = softplus(d) - d
    sp = jnp.maximum(d, 0.0) + jnp.log1p(jnp.exp(-jnp.abs(d)))
    out0 = d - sp        # = -softplus(-d) = log_softmax(...)[:, 0]
    out1 = -sp           # = -softplus(d)  = log_softmax(...)[:, 1]
    o_ref[...] = jnp.concatenate([out0, out1], axis=1)


def net_forward(x, w2, b2, w3, b3, *, max_tb=MAX_TB):
    # Glue: replicate PyTorch's x.view(-1, self.features)
    x2d = x.reshape(-1, IN_DIM).astype(jnp.float32)
    B = x2d.shape[0]

    # Precompute the fc3 "difference" column once (pure JAX, negligible).
    w3d = (w3[:, 0:1] - w3[:, 1:2]).astype(jnp.float32)          # [HID_DIM, 1]
    b3d = (b3[:, 0:1] - b3[:, 1:2]).astype(jnp.float32)          # [1, 1]

    # Batch tiling: TB multiple of 8 (sublane), capped at max_tb; pad B to a
    # multiple of TB so every grid step sees a full tile.
    TB = min(max_tb, _round_up(B, 8))
    Bp = _round_up(B, TB)
    if Bp != B:
        x2d = jnp.pad(x2d, ((0, Bp - B), (0, 0)))
    grid = (Bp // TB,)

    out = pl.pallas_call(
        mlp_logsoftmax_kernel,
        out_shape=jax.ShapeDtypeStruct((Bp, OUT_DIM), jnp.float32),
        grid_spec=pltpu.PrefetchScalarGridSpec(
            num_scalar_prefetch=0,
            grid=grid,
            in_specs=[
                # activations: tiled along the batch grid axis
                pl.BlockSpec((TB, IN_DIM), lambda i: (i, 0)),
                # parameters: constant index_map -> fetched once, stay resident
                pl.BlockSpec((IN_DIM, HID_DIM), lambda i: (0, 0)),
                pl.BlockSpec((1, HID_DIM), lambda i: (0, 0)),
                pl.BlockSpec((HID_DIM, 1), lambda i: (0, 0)),
                pl.BlockSpec((1, 1), lambda i: (0, 0)),
            ],
            out_specs=pl.BlockSpec((TB, OUT_DIM), lambda i: (i, 0)),
        ),
        compiler_params=pltpu.CompilerParams(
            dimension_semantics=("parallel",),   # shards batch across TCs on v7x
        ),
    )(x2d, w2, b2, w3d, b3d)

    return out[:B]


def init_params(key):
    # Deterministic init, mimicking nn.Linear's U(-1/sqrt(fan_in), 1/sqrt(fan_in)).
    # Weights stored transposed vs. PyTorch (as [in, out]) so the kernel does x @ W + b.
    k1, k2, k3, k4 = jax.random.split(key, 4)
    lim2 = 1.0 / jnp.sqrt(jnp.float32(IN_DIM))
    lim3 = 1.0 / jnp.sqrt(jnp.float32(HID_DIM))
    w2 = jax.random.uniform(k1, (IN_DIM, HID_DIM), jnp.float32, -lim2, lim2)
    b2 = jax.random.uniform(k2, (1, HID_DIM), jnp.float32, -lim2, lim2)
    w3 = jax.random.uniform(k3, (HID_DIM, OUT_DIM), jnp.float32, -lim3, lim3)
    b3 = jax.random.uniform(k4, (1, OUT_DIM), jnp.float32, -lim3, lim3)
    return w2, b2, w3, b3


def _reference(x, w2, b2, w3, b3):
    x2d = x.reshape(-1, IN_DIM).astype(jnp.float32)
    h = jnp.maximum(x2d @ w2 + b2, 0.0)
    logits = h @ w3 + b3
    return jax.nn.log_softmax(logits, axis=1)


if __name__ == "__main__":
    key = jax.random.PRNGKey(0)
    kx, kx2, kp = jax.random.split(key, 3)
    w2, b2, w3, b3 = init_params(kp)

    # Small example matching the module: (batch=4, 2, features=16) -> view(-1, 32).
    x_small = jax.random.normal(kx, (4, 2, FEATURES), dtype=jnp.float32)
    out_small = net_forward(x_small, w2, b2, w3, b3)
    jax.block_until_ready(out_small)
    ref_small = _reference(x_small, w2, b2, w3, b3)
    assert out_small.shape == ref_small.shape
    assert jnp.allclose(out_small, ref_small, atol=1e-5), "mismatch vs reference (small batch)"

    # Larger batch: exercises padding + multi-tile grid + parallel batch axis.
    x_big = jax.random.normal(kx2, (1500, 2, FEATURES), dtype=jnp.float32)
    out_big = net_forward(x_big, w2, b2, w3, b3)
    jax.block_until_ready(out_big)
    ref_big = _reference(x_big, w2, b2, w3, b3)
    assert out_big.shape == ref_big.shape
    assert jnp.allclose(out_big, ref_big, atol=1e-5), "mismatch vs reference (large batch)"

    print("KERNEL_OK")
</pallas_src>

<mosaic_0001>
module attributes {stable_mosaic.version = 11 : i64} {
  func.func @mlp_logsoftmax_kernel(%arg0: i32, %arg1: memref<8x32xf32, #tpu.memory_space<vmem>>, %arg2: memref<32x16xf32, #tpu.memory_space<vmem>>, %arg3: memref<1x16xf32, #tpu.memory_space<vmem>>, %arg4: memref<16x1xf32, #tpu.memory_space<vmem>>, %arg5: memref<1x1xf32, #tpu.memory_space<vmem>>, %arg6: memref<8x2xf32, #tpu.memory_space<vmem>>) attributes {dimension_semantics = [#tpu.dimension_semantics<parallel>], iteration_bounds = array<i64: 1>, scalar_prefetch = 0 : i64, scratch_operands = 0 : i64, tpu.core_type = #tpu.core_type<tc>, window_params = [{transform_indices = @transform_0, window_bounds = array<i64: 8, 32>}, {pipeline_mode = #tpu.pipeline_mode<synchronous>, transform_indices = @transform_1, window_bounds = array<i64: 32, 16>}, {pipeline_mode = #tpu.pipeline_mode<synchronous>, transform_indices = @transform_2, window_bounds = array<i64: 1, 16>}, {pipeline_mode = #tpu.pipeline_mode<synchronous>, transform_indices = @transform_3, window_bounds = array<i64: 16, 1>}, {pipeline_mode = #tpu.pipeline_mode<synchronous>, transform_indices = @transform_4, window_bounds = array<i64: 1, 1>}, {transform_indices = @transform_5, window_bounds = array<i64: 8, 2>}]} {
    %c0 = arith.constant 0 : index
    %c0_0 = arith.constant 0 : index
    %0 = vector.load %arg1[%c0, %c0_0] : memref<8x32xf32, #tpu.memory_space<vmem>>, vector<8x32xf32>
    %c0_1 = arith.constant 0 : index
    %c0_2 = arith.constant 0 : index
    %1 = vector.load %arg2[%c0_1, %c0_2] : memref<32x16xf32, #tpu.memory_space<vmem>>, vector<32x16xf32>
    %cst = arith.constant dense<0.000000e+00> : vector<8x16xf32>
    %2 = tpu.matmul %0, %1, %cst {dimension_numbers = #tpu.dot_dimension_numbers<[1], [0], [0], [1], [0, 0, 1, 1], [], []>} : vector<8x32xf32>, vector<32x16xf32>, vector<8x16xf32> -> vector<8x16xf32>
    %c0_3 = arith.constant 0 : index
    %c0_4 = arith.constant 0 : index
    %3 = vector.load %arg3[%c0_3, %c0_4] : memref<1x16xf32, #tpu.memory_space<vmem>>, vector<1x16xf32>
    %4 = vector.broadcast %3 : vector<1x16xf32> to vector<8x16xf32>
    %5 = arith.addf %2, %4 : vector<8x16xf32>
    %cst_5 = arith.constant 0.000000e+00 : f32
    %6 = vector.broadcast %cst_5 : f32 to vector<8x16xf32>
    %7 = arith.maximumf %5, %6 : vector<8x16xf32>
    %c0_6 = arith.constant 0 : index
    %c0_7 = arith.constant 0 : index
    %8 = vector.load %arg4[%c0_6, %c0_7] : memref<16x1xf32, #tpu.memory_space<vmem>>, vector<16x1xf32>
    %cst_8 = arith.constant dense<0.000000e+00> : vector<8x1xf32>
    %9 = tpu.matmul %7, %8, %cst_8 {dimension_numbers = #tpu.dot_dimension_numbers<[1], [0], [0], [1], [0, 0, 1, 1], [], []>} : vector<8x16xf32>, vector<16x1xf32>, vector<8x1xf32> -> vector<8x1xf32>
    %c0_9 = arith.constant 0 : index
    %c0_10 = arith.constant 0 : index
    %10 = vector.load %arg5[%c0_9, %c0_10] : memref<1x1xf32, #tpu.memory_space<vmem>>, vector<1x1xf32>
    %11 = vector.broadcast %10 : vector<1x1xf32> to vector<8x1xf32>
    %12 = arith.addf %9, %11 : vector<8x1xf32>
    %cst_11 = arith.constant 0.000000e+00 : f32
    %13 = vector.broadcast %cst_11 : f32 to vector<8x1xf32>
    %14 = arith.maximumf %12, %13 : vector<8x1xf32>
    %15 = math.absf %12 : vector<8x1xf32>
    %cst_12 = arith.constant 0.000000e+00 : f32
    %16 = vector.broadcast %cst_12 : f32 to vector<8x1xf32>
    %17 = arith.subf %16, %15 : vector<8x1xf32>
    %18 = math.exp %17 : vector<8x1xf32>
    %19 = math.log1p %18 : vector<8x1xf32>
    %20 = arith.addf %14, %19 : vector<8x1xf32>
    %21 = arith.subf %12, %20 : vector<8x1xf32>
    %cst_13 = arith.constant 0.000000e+00 : f32
    %22 = vector.broadcast %cst_13 : f32 to vector<8x1xf32>
    %23 = arith.subf %22, %20 : vector<8x1xf32>
    %24 = tpu.concatenate %21, %23 in 1 : vector<8x1xf32>, vector<8x1xf32> -> vector<8x2xf32>
    %c0_14 = arith.constant 0 : index
    %c0_15 = arith.constant 0 : index
    %25 = vector.load %arg6[%c0_14, %c0_15] : memref<8x2xf32, #tpu.memory_space<vmem>>, vector<8x2xf32>
    tpu.vector_store %arg6[%c0_14, %c0_15], %24 {strides = array<i32>} : memref<8x2xf32, #tpu.memory_space<vmem>>, vector<8x2xf32>,
    return
  }
  func.func @transform_0(%arg0: i32) -> (i32, i32) {
    %c0_i32 = arith.constant 0 : i32
    %c0_i32_0 = arith.constant 0 : i32
    return %arg0, %c0_i32 : i32, i32
  }
  func.func @transform_1(%arg0: i32) -> (i32, i32) {
    %c0_i32 = arith.constant 0 : i32
    %c0_i32_0 = arith.constant 0 : i32
    %c0_i32_1 = arith.constant 0 : i32
    return %c0_i32, %c0_i32_0 : i32, i32
  }
  func.func @transform_2(%arg0: i32) -> (i32, i32) {
    %c0_i32 = arith.constant 0 : i32
    %c0_i32_0 = arith.constant 0 : i32
    %c0_i32_1 = arith.constant 0 : i32
    return %c0_i32, %c0_i32_0 : i32, i32
  }
  func.func @transform_3(%arg0: i32) -> (i32, i32) {
    %c0_i32 = arith.constant 0 : i32
    %c0_i32_0 = arith.constant 0 : i32
    %c0_i32_1 = arith.constant 0 : i32
    return %c0_i32, %c0_i32_0 : i32, i32
  }
  func.func @transform_4(%arg0: i32) -> (i32, i32) {
    %c0_i32 = arith.constant 0 : i32
    %c0_i32_0 = arith.constant 0 : i32
    %c0_i32_1 = arith.constant 0 : i32
    return %c0_i32, %c0_i32_0 : i32, i32
  }
  func.func @transform_5(%arg0: i32) -> (i32, i32) {
    %c0_i32 = arith.constant 0 : i32
    %c0_i32_0 = arith.constant 0 : i32
    return %arg0, %c0_i32 : i32, i32
  }
}

</mosaic_0001>

<bundles_post_ra>
// kernel: tpu_custom_call.1
= control target key start
LH: loop header
LB: loop body
LE: loop exit
PB: predicated region body
PF: predicated region fallthrough
CT: control target
= control target key end

     0   :  { %vm31_vm0 = vcmask 261120   ;;  %vm62_vm1 = vcmask 130048   ;;  %vm107_vm3 = vcmask 7168   ;;  %vm109_vm4 = vcmask 15360   ;;  %s185_s1 = inlined_call_operand.vmem [shape: f32[32,16], index: 1, kind: input, shape index: {}]   ;;  %s186_s2 = inlined_call_operand.vmem [shape: f32[1,16], index: 2, kind: input, shape index: {}]   ;;  %s187_s0 = inlined_call_operand.vmem [shape: f32[8,32], index: 0, kind: input, shape index: {}]   ;;  %s188_s3 = inlined_call_operand.vmem [shape: f32[16,1], index: 3, kind: input, shape index: {}]   ;;  %s189_s4 = inlined_call_operand.<no memory space> [shape: f32[1,1], index: 4, kind: input, shape index: {}]   ;;  %s190_s5 = inlined_call_operand.vmem [shape: f32[8,2], index: 5, kind: output, shape index: {}]  }
   0x1   :  { %v26_v0 = vld [vmem:[%s185_s1 + $0x18] sm:$0xff]  ;;  %v25_v1 = vld [vmem:[%s185_s1 + $0x10] sm:$0xff]  ;;  %v24_v2 = vld [vmem:[%s185_s1 + $0x8] sm:$0xff]  ;;  %v10_v7 = vstv %s189_s4 }
   0x2   :  { %47 = vmatpush.msra.mxu0 %v26_v0  ;;  %v23_v3 = vld [vmem:[%s185_s1] sm:$0xff]  ;;  %v57_v5 = vld [vmem:[%s188_s3 + $0x8] sm:$0xff]  ;;  %11 = vst [vmem:[#allocation2] sm:$0x1] %v10_v7 }
   0x3   :  { %v22_v4 = vld [vmem:[%s187_s0] sm:$0xff]  ;;  %80 = vmatpush.msra.mxu1 %v57_v5 }
   0x4   :  { %48 = vmatpush.msra.mxu0 %v25_v1  ;;  %v56_v6 = vld [vmem:[%s188_s3] sm:$0xff] }
   0x5   :  { %81 = vmatpush.msra.mxu1 %v56_v6  ;;  %v118_v8 = vld [vmem:[%s186_s2] ss:$0 sm:$0xff]  ;;  %s124_s2 = smov 1  }
   0x6   :  { %49 = vmatpush.msra.mxu0 %v24_v2 }
   0x8   :  { %50 = vmatpush.msra.mxu0 %v23_v3 }
   0x9   :  { %115 = vmatmul.msk.f32.vlgmr.msra.gmra.mxu0 %vm31_vm0, %v22_v4  ;;  %v119_v12 = vld [vmem:[#allocation2] ss:$0 sm:$0xff] }
  0x86   :  { %v52_v9 = vpop.f32.mrf.mxu0 }
  0x87   :  { %v53_v10 = vadd.f32 %v118_v8, %v52_v9 }
  0x89   :  { %v55_v11 = vmax.f32 %v53_v10, 0.0 }
  0x8b   :  { %116 = vmatmul.msk.f32.vlgmr.msra.gmra.mxu1 %vm62_vm1, %v55_v11 }
 0x108   :  { %v83_v13 = vpop.f32.mrf.mxu1 }
 0x109   :  { %v84_v14 = vadd.f32 %v119_v12, %v83_v13 }
 0x10b   :  { %v87_v15 = vand.u32 2147483647, %v84_v14  ;;  %v86_v26 = vmax.f32 %v84_v14, 0.0 }
 0x10d   :  { %v88_v16 = vsub.f32 0.0, %v87_v15 }
 0x10f   :  { %v89_v17 = vmul.f32 1.442695, %v88_v16 }
 0x111   :  { %120 = vpow2.f32 %v89_v17 }
 0x117   :  { %v121_v18 = vpop.eup %120 }
 0x118   :  { %v91_v19 = vadd.f32 1.0, %v121_v18  ;;  %v94_v20 = vmul.f32 -0.5, %v121_v18  ;;  %v97_v22 = vand.u32 2147483647, %v121_v18 }
 0x11a   :  { %122 = vlog2.f32 %v91_v19  ;;  %v95_v21 = vadd.f32 1.0, %v94_v20  ;;  %vm98_vm2 = vcmp.lt.f32.partialorder %v97_v22, 0.0004427343 }
 0x11c   :  { %v96_v25 = vmul.f32 %v121_v18, %v95_v21 }
 0x120   :  { %v123_v23 = vpop.eup %122 }
 0x121   :  { %v93_v24 = vmul.f32 0.6931472, %v123_v23 }
 0x123   :  { %v99_v27 = vsel %vm98_vm2, %v96_v25, %v93_v24 }
 0x124   :  { %v100_v28 = vadd.f32 %v99_v27, %v86_v26 }
 0x126   :  { %v101_v29 = vsub.f32 %v84_v14, %v100_v28  ;;  %v102_v30 = vsub.f32 0.0, %v100_v28 }
 0x128   :  { %104 = vrot.lane.b32.xlu0 %v102_v30, %s124_s2 }
 0x19a   :  { %v105_v31 = vpop.permute.xlu0 %104 }
 0x19b   :  { %v108_v32 = vsel %vm107_vm3, %v101_v29, %v105_v31 }
 0x19c   :  { %110 = vst.msk [vmem:[%s190_s5] sm:$0xff] %vm109_vm4, %v108_v32 }

</bundles_post_ra>
